<compile_context>
chip_gen: v7x
topology: tpu7x:2x2x1
jax: 0.10.0
libtpu: 0.0.40
codegen_flags: <defaults>
</compile_context>

<pallas_src>
import functools

import jax
import jax.numpy as jnp
from jax.experimental import pallas as pl
from jax.experimental.pallas import tpu as pltpu


# ----------------------------- helpers -------------------------------------- #

def _pick_nb(N, c_in, c_mid, c_out, L, *, vmem_block_budget=6 << 20,
             prefer_multi_step=True):
    """Samples per grid step: largest divisor of N that fits the VMEM budget,
    keeps lane-dense blocks, and (optionally) leaves >=2 grid steps for v7x."""
    c_max = max(c_in, c_mid, c_out)
    # Conservative per-sample footprint per step (blocks are double-buffered
    # and the kernel holds a few f32 temporaries of the same lane extent).
    bytes_per_sample = L * 4 * (4 * c_max + 2 * (c_in + c_mid + c_out))
    cap = max(1, vmem_block_budget // bytes_per_sample)
    if prefer_multi_step and N >= 2:
        cap = min(cap, (N + 1) // 2)       # keep >=2 steps (v7x has 2 TCs)
    best = None
    for d in range(1, N + 1):
        if N % d != 0:
            continue
        if d != N and (d * L) % 128 != 0:  # partial blocks must stay lane-dense
            continue
        if d <= cap:
            best = d
    return best if best is not None else N


def _conv_taps_matmul(x2, w_ref, *, k, pad, L):
    """Conv1d('same', no bias) on a channel-major slab.

    x2:    (C_in, Nb*L) f32 activations (Nb samples concatenated along lanes)
    w_ref: (k, C_out, C_in) bf16 weights, one (C_out, C_in) matrix per tap
    returns (C_out, Nb*L) f32
    """
    c_in, nbl = x2.shape
    w = w_ref[...]
    lane = jax.lax.broadcasted_iota(jnp.int32, (c_in, nbl), 1)
    # Per-sample position so taps don't leak across sample boundaries.
    pos = (lane & (L - 1)) if (L & (L - 1)) == 0 else (lane % L)

    acc = None
    for t in range(k):                      # k is a small static constant
        off = t - pad
        if off == 0:
            tap = x2
        else:
            rolled = pltpu.roll(x2, (-off) % nbl, 1)        # XLU lane roll
            valid = jnp.logical_and(pos + off >= 0, pos + off < L)
            tap = jnp.where(valid, rolled, 0.0)             # zero 'same' pad
        part = jnp.dot(w[t], tap.astype(jnp.bfloat16),
                       preferred_element_type=jnp.float32)  # MXU, f32 acc
        acc = part if acc is None else acc + part
    return acc


# ------------------------------ kernels -------------------------------------- #

def _conv_stats_kernel(*refs, k, pad, L, pre_affine_relu):
    """[optional fused BN-affine + ReLU] -> Conv1d -> per-step BN partials.

    pre_affine_relu=False (pass 1):
        refs = (x_ref (Nb, C_in, L) f32, w_ref, out_ref, stats_ref)
    pre_affine_relu=True  (pass 2):
        refs = (h_ref (C_in, Nb*L) bf16, w_ref, scale_ref (C_in,1),
                bias_ref (C_in,1), out_ref, stats_ref)
    out_ref:   (C_out, Nb*L)   conv output (channel-major, lane-dense)
    stats_ref: (1, C_out, 2)   [sum, sum-of-squares] over this step's Nb*L lanes
    """
    if pre_affine_relu:
        x_ref, w_ref, scale_ref, bias_ref, out_ref, stats_ref = refs
        x2 = x_ref[...].astype(jnp.float32)
        # Previous BatchNorm folded to a single multiply-add, then ReLU (f32).
        x2 = jnp.maximum(x2 * scale_ref[...] + bias_ref[...], 0.0)
    else:
        x_ref, w_ref, out_ref, stats_ref = refs
        x = x_ref[...]                                   # (Nb, C_in, L) f32
        nb = x.shape[0]
        # NCL -> channel-major (C_in, Nb*L): concat the samples along lanes.
        x2 = x[0] if nb == 1 else jnp.concatenate(
            [x[i] for i in range(nb)], axis=1)

    acc = _conv_taps_matmul(x2, w_ref, k=k, pad=pad, L=L)   # (C_out, Nb*L) f32

    out_ref[...] = acc.astype(out_ref.dtype)                # lane-dense store
    s = jnp.sum(acc, axis=1, keepdims=True)                 # (C_out, 1)
    ss = jnp.sum(acc * acc, axis=1, keepdims=True)          # (C_out, 1)
    stats_ref[0] = jnp.concatenate([s, ss], axis=1)         # (C_out, 2)


def _affine_relu_kernel(h_ref, scale_ref, bias_ref, o_ref, *, L):
    """Final BatchNorm (fused scale/bias) + ReLU, channel-major in -> NCL out."""
    y = jnp.maximum(h_ref[...].astype(jnp.float32) * scale_ref[...]
                    + bias_ref[...], 0.0)
    y = y.astype(o_ref.dtype)
    nb = o_ref.shape[0]
    for i in range(nb):                                  # static, small
        o_ref[i] = y[:, i * L:(i + 1) * L]


# --------------------------- pallas_call wrappers ---------------------------- #

_VMEM_LIMIT = 32 * 1024 * 1024   # safe on v5e (128 MiB), v6e (128), v7x (64)


def _conv_pass1(x, w_k, *, k, pad, nb, out_dtype):
    """x (N, C_in, L) f32 -> (h1 (C_out, N*L) out_dtype, stats (G, C_out, 2))."""
    N, c_in, L = x.shape
    c_out = w_k.shape[1]
    G = N // nb
    kernel = functools.partial(_conv_stats_kernel, k=k, pad=pad, L=L,
                               pre_affine_relu=False)
    return pl.pallas_call(
        kernel,
        out_shape=(jax.ShapeDtypeStruct((c_out, N * L), out_dtype),
                   jax.ShapeDtypeStruct((G, c_out, 2), jnp.float32)),
        grid=(G,),
        in_specs=[
            pl.BlockSpec((nb, c_in, L), lambda g: (g, 0, 0)),
            pl.BlockSpec(w_k.shape, lambda g: (0, 0, 0)),
        ],
        out_specs=(
            pl.BlockSpec((c_out, nb * L), lambda g: (0, g)),
            pl.BlockSpec((1, c_out, 2), lambda g: (g, 0, 0)),
        ),
        compiler_params=pltpu.CompilerParams(
            dimension_semantics=("parallel",),
            vmem_limit_bytes=_VMEM_LIMIT),
    )(x, w_k)


def _conv_pass2(h, w_k, scale, bias, *, k, pad, nb, L, out_dtype):
    """h (C_in, N*L) -> fused BN+ReLU -> conv -> (h2, stats)."""
    c_in, NL = h.shape
    N = NL // L
    c_out = w_k.shape[1]
    G = N // nb
    kernel = functools.partial(_conv_stats_kernel, k=k, pad=pad, L=L,
                               pre_affine_relu=True)
    return pl.pallas_call(
        kernel,
        out_shape=(jax.ShapeDtypeStruct((c_out, NL), out_dtype),
                   jax.ShapeDtypeStruct((G, c_out, 2), jnp.float32)),
        grid=(G,),
        in_specs=[
            pl.BlockSpec((c_in, nb * L), lambda g: (0, g)),
            pl.BlockSpec(w_k.shape, lambda g: (0, 0, 0)),
            pl.BlockSpec(scale.shape, lambda g: (0, 0)),
            pl.BlockSpec(bias.shape, lambda g: (0, 0)),
        ],
        out_specs=(
            pl.BlockSpec((c_out, nb * L), lambda g: (0, g)),
            pl.BlockSpec((1, c_out, 2), lambda g: (g, 0, 0)),
        ),
        compiler_params=pltpu.CompilerParams(
            dimension_semantics=("parallel",),
            vmem_limit_bytes=_VMEM_LIMIT),
    )(h, w_k, scale, bias)


def _affine_relu_pass(h, scale, bias, *, nb, L, out_dtype):
    """h (C, N*L) -> BN+ReLU -> (N, C, L) PyTorch layout."""
    c, NL = h.shape
    N = NL // L
    G = N // nb
    kernel = functools.partial(_affine_relu_kernel, L=L)
    return pl.pallas_call(
        kernel,
        out_shape=jax.ShapeDtypeStruct((N, c, L), out_dtype),
        grid=(G,),
        in_specs=[
            pl.BlockSpec((c, nb * L), lambda g: (0, g)),
            pl.BlockSpec(scale.shape, lambda g: (0, 0)),
            pl.BlockSpec(bias.shape, lambda g: (0, 0)),
        ],
        out_specs=pl.BlockSpec((nb, c, L), lambda g: (g, 0, 0)),
        compiler_params=pltpu.CompilerParams(
            dimension_semantics=("parallel",),
            vmem_limit_bytes=_VMEM_LIMIT),
    )(h, scale, bias)


def _bn_scale_bias(stats, gamma, beta, count, eps):
    """Fold training-mode BatchNorm into per-channel scale/bias (tiny, JAX)."""
    tot = stats.sum(axis=0)                        # (C, 2)
    mean = tot[:, 0] / count
    var = tot[:, 1] / count - mean * mean          # biased variance
    var = jnp.maximum(var, 0.0)                    # guard f32 cancellation
    scale = gamma.astype(jnp.float32) * jax.lax.rsqrt(var + eps)
    bias = beta.astype(jnp.float32) - mean * scale
    return scale.reshape(-1, 1), bias.reshape(-1, 1)


def double_conv(x, w1, gamma1, beta1, w2, gamma2, beta2, eps=1e-5):
    """x: (N, C_in, L) like PyTorch.  w: (C_out, C_in, k) like Conv1d."""
    N, c_in, L = x.shape
    c_mid, _, k = w1.shape
    c_out = w2.shape[0]
    assert k % 2 == 1, "kernel_size assumed odd so padding=k//2 keeps length"
    pad = k // 2

    x = x.astype(jnp.float32)
    # Tap-major weights: w_k[t, co, ci] = w[co, ci, t]  (one matrix per tap).
    w1_k = jnp.transpose(w1, (2, 0, 1)).astype(jnp.bfloat16)
    w2_k = jnp.transpose(w2, (2, 0, 1)).astype(jnp.bfloat16)

    nb = _pick_nb(N, c_in, c_mid, c_out, L)

    # Pass 1: conv1 + per-step BN1 partial stats (h1 stored bf16 in HBM).
    h1, st1 = _conv_pass1(x, w1_k, k=k, pad=pad, nb=nb, out_dtype=jnp.bfloat16)
    scale1, bias1 = _bn_scale_bias(st1, gamma1, beta1, N * L, eps)

    # Pass 2: BN1 + ReLU (fused affine) + conv2 + per-step BN2 partial stats.
    h2, st2 = _conv_pass2(h1, w2_k, scale1, bias1, k=k, pad=pad, nb=nb, L=L,
                          out_dtype=jnp.float32)
    scale2, bias2 = _bn_scale_bias(st2, gamma2, beta2, N * L, eps)

    # Pass 3: BN2 + ReLU, back to (N, C_out, L).
    return _affine_relu_pass(h2, scale2, bias2, nb=nb, L=L,
                             out_dtype=jnp.float32)


# ------------------------------ reference ------------------------------------ #

def _reference_double_conv(x, w1, g1, b1, w2, g2, b2, eps=1e-5):
    """Pure-JAX reference matching the PyTorch forward (training-mode BN)."""
    def conv(x, w):
        p = w.shape[2] // 2
        return jax.lax.conv_general_dilated(
            x, w, window_strides=(1,), padding=[(p, p)],
            dimension_numbers=("NCH", "OIH", "NCH"),
            precision=jax.lax.Precision.HIGHEST)

    def bn_relu(h, g, b):
        m = h.mean(axis=(0, 2), keepdims=True)
        v = ((h - m) ** 2).mean(axis=(0, 2), keepdims=True)
        hn = g.reshape(1, -1, 1) * (h - m) / jnp.sqrt(v + eps) + b.reshape(1, -1, 1)
        return jnp.maximum(hn, 0.0)

    h = bn_relu(conv(x, w1), g1, b1)
    return bn_relu(conv(h, w2), g2, b2)


if __name__ == "__main__":
    # DoubleConv(in_channels=4, out_channels=8, kernel_size=3) -> mid_channels=8
    N, C_IN, L = 4, 4, 128            # L multiple of 128 -> lane-dense tiles
    C_MID, C_OUT, K = 8, 8, 3

    key = jax.random.PRNGKey(0)
    kx, kw1, kw2 = jax.random.split(key, 3)

    x = jax.random.normal(kx, (N, C_IN, L), dtype=jnp.float32)
    bound1 = 1.0 / (C_IN * K) ** 0.5
    bound2 = 1.0 / (C_MID * K) ** 0.5
    w1 = jax.random.uniform(kw1, (C_MID, C_IN, K), jnp.float32, -bound1, bound1)
    w2 = jax.random.uniform(kw2, (C_OUT, C_MID, K), jnp.float32, -bound2, bound2)
    gamma1 = jnp.ones((C_MID,), jnp.float32)
    beta1 = jnp.zeros((C_MID,), jnp.float32)
    gamma2 = jnp.ones((C_OUT,), jnp.float32)
    beta2 = jnp.zeros((C_OUT,), jnp.float32)

    fwd = jax.jit(double_conv)
    y = jax.block_until_ready(fwd(x, w1, gamma1, beta1, w2, gamma2, beta2))

    y_ref = _reference_double_conv(x, w1, gamma1, beta1, w2, gamma2, beta2)
    assert y.shape == (N, C_OUT, L)
    # bf16 MXU operands + bf16 h1 intermediate (f32 accumulate / f32 BN math)
    # -> relaxed tolerance vs the f32 reference.
    max_err = float(jnp.max(jnp.abs(y - y_ref)))
    assert jnp.allclose(y, y_ref, atol=2e-2, rtol=2e-2), \
        f"mismatch vs reference (max abs err {max_err})"

    print("KERNEL_OK")
</pallas_src>

<mosaic_0001>
module attributes {stable_mosaic.version = 11 : i64} {
  func.func @_conv_stats_kernel(%arg0: i32, %arg1: memref<2x4x128xf32, #tpu.memory_space<vmem>>, %arg2: memref<3x8x4xbf16, #tpu.memory_space<vmem>>, %arg3: memref<8x256xbf16, #tpu.memory_space<vmem>>, %arg4: memref<1x8x2xf32, #tpu.memory_space<vmem>>) attributes {dimension_semantics = [#tpu.dimension_semantics<parallel>], iteration_bounds = array<i64: 2>, scalar_prefetch = 0 : i64, scratch_operands = 0 : i64, tpu.core_type = #tpu.core_type<tc>, window_params = [{transform_indices = @transform_0, window_bounds = array<i64: 2, 4, 128>}, {pipeline_mode = #tpu.pipeline_mode<synchronous>, transform_indices = @transform_1, window_bounds = array<i64: 3, 8, 4>}, {transform_indices = @transform_2, window_bounds = array<i64: 8, 256>}, {transform_indices = @transform_3, window_bounds = array<i64: 1, 8, 2>}]} {
    %c0 = arith.constant 0 : index
    %c0_0 = arith.constant 0 : index
    %c0_1 = arith.constant 0 : index
    %0 = vector.load %arg1[%c0, %c0_0, %c0_1] : memref<2x4x128xf32, #tpu.memory_space<vmem>>, vector<2x4x128xf32>
    %1 = vector.extract_strided_slice %0 {offsets = [0, 0, 0], sizes = [1, 4, 128], strides = [1, 1, 1]} : vector<2x4x128xf32> to vector<1x4x128xf32>
    %2 = vector.shape_cast %1 : vector<1x4x128xf32> to vector<4x128xf32>
    %3 = vector.extract_strided_slice %0 {offsets = [1, 0, 0], sizes = [1, 4, 128], strides = [1, 1, 1]} : vector<2x4x128xf32> to vector<1x4x128xf32>
    %4 = vector.shape_cast %3 : vector<1x4x128xf32> to vector<4x128xf32>
    %5 = tpu.concatenate %2, %4 in 1 : vector<4x128xf32>, vector<4x128xf32> -> vector<4x256xf32>
    %c0_2 = arith.constant 0 : index
    %c0_3 = arith.constant 0 : index
    %c0_4 = arith.constant 0 : index
    %6 = vector.load %arg2[%c0_2, %c0_3, %c0_4] : memref<3x8x4xbf16, #tpu.memory_space<vmem>>, vector<3x8x4xbf16>
    %7 = tpu.iota {dimensions = array<i32: 1>} : vector<4x256xi32>
    %c127_i32 = arith.constant 127 : i32
    %8 = vector.broadcast %c127_i32 : i32 to vector<4x256xi32>
    %9 = arith.andi %7, %8 : vector<4x256xi32>
    %c1_i32 = arith.constant 1 : i32
    %10 = tpu.dynamic_rotate %5 by %c1_i32 dim 1 : vector<4x256xf32>, i32 -> vector<4x256xf32>
    %c-1_i32 = arith.constant -1 : i32
    %11 = vector.broadcast %c-1_i32 : i32 to vector<4x256xi32>
    %12 = arith.addi %9, %11 : vector<4x256xi32>
    %c0_i32 = arith.constant 0 : i32
    %13 = vector.broadcast %c0_i32 : i32 to vector<4x256xi32>
    %14 = arith.cmpi sge, %12, %13 : vector<4x256xi32>
    %c-1_i32_5 = arith.constant -1 : i32
    %15 = vector.broadcast %c-1_i32_5 : i32 to vector<4x256xi32>
    %16 = arith.addi %9, %15 : vector<4x256xi32>
    %c128_i32 = arith.constant 128 : i32
    %17 = vector.broadcast %c128_i32 : i32 to vector<4x256xi32>
    %18 = arith.cmpi slt, %16, %17 : vector<4x256xi32>
    %19 = arith.andi %14, %18 : vector<4x256xi1>
    %cst = arith.constant 0.000000e+00 : f32
    %20 = vector.broadcast %cst : f32 to vector<4x256xf32>
    %21 = arith.select %19, %10, %20 : vector<4x256xi1>, vector<4x256xf32>
    %22 = vector.extract_strided_slice %6 {offsets = [0, 0, 0], sizes = [1, 8, 4], strides = [1, 1, 1]} : vector<3x8x4xbf16> to vector<1x8x4xbf16>
    %23 = vector.shape_cast %22 : vector<1x8x4xbf16> to vector<8x4xbf16>
    %24 = arith.truncf %21 : vector<4x256xf32> to vector<4x256xbf16>
    %cst_6 = arith.constant dense<0.000000e+00> : vector<8x256xf32>
    %25 = tpu.matmul %23, %24, %cst_6 {dimension_numbers = #tpu.dot_dimension_numbers<[1], [0], [0], [1], [0, 0, 1, 1], [], []>} : vector<8x4xbf16>, vector<4x256xbf16>, vector<8x256xf32> -> vector<8x256xf32>
    %26 = vector.extract_strided_slice %6 {offsets = [1, 0, 0], sizes = [1, 8, 4], strides = [1, 1, 1]} : vector<3x8x4xbf16> to vector<1x8x4xbf16>
    %27 = vector.shape_cast %26 : vector<1x8x4xbf16> to vector<8x4xbf16>
    %28 = arith.truncf %5 : vector<4x256xf32> to vector<4x256xbf16>
    %cst_7 = arith.constant dense<0.000000e+00> : vector<8x256xf32>
    %29 = tpu.matmul %27, %28, %cst_7 {dimension_numbers = #tpu.dot_dimension_numbers<[1], [0], [0], [1], [0, 0, 1, 1], [], []>} : vector<8x4xbf16>, vector<4x256xbf16>, vector<8x256xf32> -> vector<8x256xf32>
    %30 = arith.addf %25, %29 : vector<8x256xf32>
    %c255_i32 = arith.constant 255 : i32
    %31 = tpu.dynamic_rotate %5 by %c255_i32 dim 1 : vector<4x256xf32>, i32 -> vector<4x256xf32>
    %c1_i32_8 = arith.constant 1 : i32
    %32 = vector.broadcast %c1_i32_8 : i32 to vector<4x256xi32>
    %33 = arith.addi %9, %32 : vector<4x256xi32>
    %c0_i32_9 = arith.constant 0 : i32
    %34 = vector.broadcast %c0_i32_9 : i32 to vector<4x256xi32>
    %35 = arith.cmpi sge, %33, %34 : vector<4x256xi32>
    %c1_i32_10 = arith.constant 1 : i32
    %36 = vector.broadcast %c1_i32_10 : i32 to vector<4x256xi32>
    %37 = arith.addi %9, %36 : vector<4x256xi32>
    %c128_i32_11 = arith.constant 128 : i32
    %38 = vector.broadcast %c128_i32_11 : i32 to vector<4x256xi32>
    %39 = arith.cmpi slt, %37, %38 : vector<4x256xi32>
    %40 = arith.andi %35, %39 : vector<4x256xi1>
    %cst_12 = arith.constant 0.000000e+00 : f32
    %41 = vector.broadcast %cst_12 : f32 to vector<4x256xf32>
    %42 = arith.select %40, %31, %41 : vector<4x256xi1>, vector<4x256xf32>
    %43 = vector.extract_strided_slice %6 {offsets = [2, 0, 0], sizes = [1, 8, 4], strides = [1, 1, 1]} : vector<3x8x4xbf16> to vector<1x8x4xbf16>
    %44 = vector.shape_cast %43 : vector<1x8x4xbf16> to vector<8x4xbf16>
    %45 = arith.truncf %42 : vector<4x256xf32> to vector<4x256xbf16>
    %cst_13 = arith.constant dense<0.000000e+00> : vector<8x256xf32>
    %46 = tpu.matmul %44, %45, %cst_13 {dimension_numbers = #tpu.dot_dimension_numbers<[1], [0], [0], [1], [0, 0, 1, 1], [], []>} : vector<8x4xbf16>, vector<4x256xbf16>, vector<8x256xf32> -> vector<8x256xf32>
    %47 = arith.addf %30, %46 : vector<8x256xf32>
    %48 = arith.truncf %47 : vector<8x256xf32> to vector<8x256xbf16>
    %c0_14 = arith.constant 0 : index
    %c0_15 = arith.constant 0 : index
    %49 = vector.load %arg3[%c0_14, %c0_15] : memref<8x256xbf16, #tpu.memory_space<vmem>>, vector<8x256xbf16>
    tpu.vector_store %arg3[%c0_14, %c0_15], %48 {strides = array<i32>} : memref<8x256xbf16, #tpu.memory_space<vmem>>, vector<8x256xbf16>,
    %cst_16 = arith.constant dense<0.000000e+00> : vector<8xf32>
    %50 = vector.multi_reduction <add>, %47, %cst_16 [1] : vector<8x256xf32> to vector<8xf32>
    %51 = vector.shape_cast %50 : vector<8xf32> to vector<8x1xf32>
    %52 = arith.mulf %47, %47 : vector<8x256xf32>
    %cst_17 = arith.constant dense<0.000000e+00> : vector<8xf32>
    %53 = vector.multi_reduction <add>, %52, %cst_17 [1] : vector<8x256xf32> to vector<8xf32>
    %54 = vector.shape_cast %53 : vector<8xf32> to vector<8x1xf32>
    %55 = tpu.concatenate %51, %54 in 1 : vector<8x1xf32>, vector<8x1xf32> -> vector<8x2xf32>
    %c0_18 = arith.constant 0 : index
    %c0_19 = arith.constant 0 : index
    %c0_20 = arith.constant 0 : index
    %56 = vector.load %arg4[%c0_18, %c0_19, %c0_20] : memref<1x8x2xf32, #tpu.memory_space<vmem>>, vector<1x8x2xf32>
    %57 = vector.shape_cast %56 : vector<1x8x2xf32> to vector<8x2xf32>
    %58 = vector.shape_cast %55 : vector<8x2xf32> to vector<1x8x2xf32>
    tpu.vector_store %arg4[%c0_18, %c0_19, %c0_20], %58 {strides = array<i32>} : memref<1x8x2xf32, #tpu.memory_space<vmem>>, vector<1x8x2xf32>,
    return
  }
  func.func @transform_0(%arg0: i32) -> (i32, i32, i32) {
    %c0_i32 = arith.constant 0 : i32
    %c0_i32_0 = arith.constant 0 : i32
    %c0_i32_1 = arith.constant 0 : i32
    return %arg0, %c0_i32, %c0_i32_0 : i32, i32, i32
  }
  func.func @transform_1(%arg0: i32) -> (i32, i32, i32) {
    %c0_i32 = arith.constant 0 : i32
    %c0_i32_0 = arith.constant 0 : i32
    %c0_i32_1 = arith.constant 0 : i32
    %c0_i32_2 = arith.constant 0 : i32
    return %c0_i32, %c0_i32_0, %c0_i32_1 : i32, i32, i32
  }
  func.func @transform_2(%arg0: i32) -> (i32, i32) {
    %c0_i32 = arith.constant 0 : i32
    %c0_i32_0 = arith.constant 0 : i32
    return %c0_i32, %arg0 : i32, i32
  }
  func.func @transform_3(%arg0: i32) -> (i32, i32, i32) {
    %c0_i32 = arith.constant 0 : i32
    %c0_i32_0 = arith.constant 0 : i32
    %c0_i32_1 = arith.constant 0 : i32
    return %arg0, %c0_i32, %c0_i32_0 : i32, i32, i32
  }
}

module attributes {stable_mosaic.version = 11 : i64} {
  func.func @_conv_stats_kernel(%arg0: i32, %arg1: memref<8x256xbf16, #tpu.memory_space<vmem>>, %arg2: memref<3x8x8xbf16, #tpu.memory_space<vmem>>, %arg3: memref<8x1xf32, #tpu.memory_space<vmem>>, %arg4: memref<8x1xf32, #tpu.memory_space<vmem>>, %arg5: memref<8x256xf32, #tpu.memory_space<vmem>>, %arg6: memref<1x8x2xf32, #tpu.memory_space<vmem>>) attributes {dimension_semantics = [#tpu.dimension_semantics<parallel>], iteration_bounds = array<i64: 2>, scalar_prefetch = 0 : i64, scratch_operands = 0 : i64, tpu.core_type = #tpu.core_type<tc>, window_params = [{transform_indices = @transform_0, window_bounds = array<i64: 8, 256>}, {pipeline_mode = #tpu.pipeline_mode<synchronous>, transform_indices = @transform_1, window_bounds = array<i64: 3, 8, 8>}, {pipeline_mode = #tpu.pipeline_mode<synchronous>, transform_indices = @transform_2, window_bounds = array<i64: 8, 1>}, {pipeline_mode = #tpu.pipeline_mode<synchronous>, transform_indices = @transform_3, window_bounds = array<i64: 8, 1>}, {transform_indices = @transform_4, window_bounds = array<i64: 8, 256>}, {transform_indices = @transform_5, window_bounds = array<i64: 1, 8, 2>}]} {
    %c0 = arith.constant 0 : index
    %c0_0 = arith.constant 0 : index
    %0 = vector.load %arg1[%c0, %c0_0] : memref<8x256xbf16, #tpu.memory_space<vmem>>, vector<8x256xbf16>
    %1 = arith.extf %0 : vector<8x256xbf16> to vector<8x256xf32>
    %c0_1 = arith.constant 0 : index
    %c0_2 = arith.constant 0 : index
    %2 = vector.load %arg3[%c0_1, %c0_2] : memref<8x1xf32, #tpu.memory_space<vmem>>, vector<8x1xf32>
    %3 = vector.broadcast %2 : vector<8x1xf32> to vector<8x256xf32>
    %4 = arith.mulf %1, %3 : vector<8x256xf32>
    %c0_3 = arith.constant 0 : index
    %c0_4 = arith.constant 0 : index
    %5 = vector.load %arg4[%c0_3, %c0_4] : memref<8x1xf32, #tpu.memory_space<vmem>>, vector<8x1xf32>
    %6 = vector.broadcast %5 : vector<8x1xf32> to vector<8x256xf32>
    %7 = arith.addf %4, %6 : vector<8x256xf32>
    %cst = arith.constant 0.000000e+00 : f32
    %8 = vector.broadcast %cst : f32 to vector<8x256xf32>
    %9 = arith.maximumf %7, %8 : vector<8x256xf32>
    %c0_5 = arith.constant 0 : index
    %c0_6 = arith.constant 0 : index
    %c0_7 = arith.constant 0 : index
    %10 = vector.load %arg2[%c0_5, %c0_6, %c0_7] : memref<3x8x8xbf16, #tpu.memory_space<vmem>>, vector<3x8x8xbf16>
    %11 = tpu.iota {dimensions = array<i32: 1>} : vector<8x256xi32>
    %c127_i32 = arith.constant 127 : i32
    %12 = vector.broadcast %c127_i32 : i32 to vector<8x256xi32>
    %13 = arith.andi %11, %12 : vector<8x256xi32>
    %c1_i32 = arith.constant 1 : i32
    %14 = tpu.dynamic_rotate %9 by %c1_i32 dim 1 : vector<8x256xf32>, i32 -> vector<8x256xf32>
    %c-1_i32 = arith.constant -1 : i32
    %15 = vector.broadcast %c-1_i32 : i32 to vector<8x256xi32>
    %16 = arith.addi %13, %15 : vector<8x256xi32>
    %c0_i32 = arith.constant 0 : i32
    %17 = vector.broadcast %c0_i32 : i32 to vector<8x256xi32>
    %18 = arith.cmpi sge, %16, %17 : vector<8x256xi32>
    %c-1_i32_8 = arith.constant -1 : i32
    %19 = vector.broadcast %c-1_i32_8 : i32 to vector<8x256xi32>
    %20 = arith.addi %13, %19 : vector<8x256xi32>
    %c128_i32 = arith.constant 128 : i32
    %21 = vector.broadcast %c128_i32 : i32 to vector<8x256xi32>
    %22 = arith.cmpi slt, %20, %21 : vector<8x256xi32>
    %23 = arith.andi %18, %22 : vector<8x256xi1>
    %cst_9 = arith.constant 0.000000e+00 : f32
    %24 = vector.broadcast %cst_9 : f32 to vector<8x256xf32>
    %25 = arith.select %23, %14, %24 : vector<8x256xi1>, vector<8x256xf32>
    %26 = vector.extract_strided_slice %10 {offsets = [0, 0, 0], sizes = [1, 8, 8], strides = [1, 1, 1]} : vector<3x8x8xbf16> to vector<1x8x8xbf16>
    %27 = vector.shape_cast %26 : vector<1x8x8xbf16> to vector<8x8xbf16>
    %28 = arith.truncf %25 : vector<8x256xf32> to vector<8x256xbf16>
    %cst_10 = arith.constant dense<0.000000e+00> : vector<8x256xf32>
    %29 = tpu.matmul %27, %28, %cst_10 {dimension_numbers = #tpu.dot_dimension_numbers<[1], [0], [0], [1], [0, 0, 1, 1], [], []>} : vector<8x8xbf16>, vector<8x256xbf16>, vector<8x256xf32> -> vector<8x256xf32>
    %30 = vector.extract_strided_slice %10 {offsets = [1, 0, 0], sizes = [1, 8, 8], strides = [1, 1, 1]} : vector<3x8x8xbf16> to vector<1x8x8xbf16>
    %31 = vector.shape_cast %30 : vector<1x8x8xbf16> to vector<8x8xbf16>
    %32 = arith.truncf %9 : vector<8x256xf32> to vector<8x256xbf16>
    %cst_11 = arith.constant dense<0.000000e+00> : vector<8x256xf32>
    %33 = tpu.matmul %31, %32, %cst_11 {dimension_numbers = #tpu.dot_dimension_numbers<[1], [0], [0], [1], [0, 0, 1, 1], [], []>} : vector<8x8xbf16>, vector<8x256xbf16>, vector<8x256xf32> -> vector<8x256xf32>
    %34 = arith.addf %29, %33 : vector<8x256xf32>
    %c255_i32 = arith.constant 255 : i32
    %35 = tpu.dynamic_rotate %9 by %c255_i32 dim 1 : vector<8x256xf32>, i32 -> vector<8x256xf32>
    %c1_i32_12 = arith.constant 1 : i32
    %36 = vector.broadcast %c1_i32_12 : i32 to vector<8x256xi32>
    %37 = arith.addi %13, %36 : vector<8x256xi32>
    %c0_i32_13 = arith.constant 0 : i32
    %38 = vector.broadcast %c0_i32_13 : i32 to vector<8x256xi32>
    %39 = arith.cmpi sge, %37, %38 : vector<8x256xi32>
    %c1_i32_14 = arith.constant 1 : i32
    %40 = vector.broadcast %c1_i32_14 : i32 to vector<8x256xi32>
    %41 = arith.addi %13, %40 : vector<8x256xi32>
    %c128_i32_15 = arith.constant 128 : i32
    %42 = vector.broadcast %c128_i32_15 : i32 to vector<8x256xi32>
    %43 = arith.cmpi slt, %41, %42 : vector<8x256xi32>
    %44 = arith.andi %39, %43 : vector<8x256xi1>
    %cst_16 = arith.constant 0.000000e+00 : f32
    %45 = vector.broadcast %cst_16 : f32 to vector<8x256xf32>
    %46 = arith.select %44, %35, %45 : vector<8x256xi1>, vector<8x256xf32>
    %47 = vector.extract_strided_slice %10 {offsets = [2, 0, 0], sizes = [1, 8, 8], strides = [1, 1, 1]} : vector<3x8x8xbf16> to vector<1x8x8xbf16>
    %48 = vector.shape_cast %47 : vector<1x8x8xbf16> to vector<8x8xbf16>
    %49 = arith.truncf %46 : vector<8x256xf32> to vector<8x256xbf16>
    %cst_17 = arith.constant dense<0.000000e+00> : vector<8x256xf32>
    %50 = tpu.matmul %48, %49, %cst_17 {dimension_numbers = #tpu.dot_dimension_numbers<[1], [0], [0], [1], [0, 0, 1, 1], [], []>} : vector<8x8xbf16>, vector<8x256xbf16>, vector<8x256xf32> -> vector<8x256xf32>
    %51 = arith.addf %34, %50 : vector<8x256xf32>
    %c0_18 = arith.constant 0 : index
    %c0_19 = arith.constant 0 : index
    %52 = vector.load %arg5[%c0_18, %c0_19] : memref<8x256xf32, #tpu.memory_space<vmem>>, vector<8x256xf32>
    tpu.vector_store %arg5[%c0_18, %c0_19], %51 {strides = array<i32>} : memref<8x256xf32, #tpu.memory_space<vmem>>, vector<8x256xf32>,
    %cst_20 = arith.constant dense<0.000000e+00> : vector<8xf32>
    %53 = vector.multi_reduction <add>, %51, %cst_20 [1] : vector<8x256xf32> to vector<8xf32>
    %54 = vector.shape_cast %53 : vector<8xf32> to vector<8x1xf32>
    %55 = arith.mulf %51, %51 : vector<8x256xf32>
    %cst_21 = arith.constant dense<0.000000e+00> : vector<8xf32>
    %56 = vector.multi_reduction <add>, %55, %cst_21 [1] : vector<8x256xf32> to vector<8xf32>
    %57 = vector.shape_cast %56 : vector<8xf32> to vector<8x1xf32>
    %58 = tpu.concatenate %54, %57 in 1 : vector<8x1xf32>, vector<8x1xf32> -> vector<8x2xf32>
    %c0_22 = arith.constant 0 : index
    %c0_23 = arith.constant 0 : index
    %c0_24 = arith.constant 0 : index
    %59 = vector.load %arg6[%c0_22, %c0_23, %c0_24] : memref<1x8x2xf32, #tpu.memory_space<vmem>>, vector<1x8x2xf32>
    %60 = vector.shape_cast %59 : vector<1x8x2xf32> to vector<8x2xf32>
    %61 = vector.shape_cast %58 : vector<8x2xf32> to vector<1x8x2xf32>
    tpu.vector_store %arg6[%c0_22, %c0_23, %c0_24], %61 {strides = array<i32>} : memref<1x8x2xf32, #tpu.memory_space<vmem>>, vector<1x8x2xf32>,
    return
  }
  func.func @transform_0(%arg0: i32) -> (i32, i32) {
    %c0_i32 = arith.constant 0 : i32
    %c0_i32_0 = arith.constant 0 : i32
    return %c0_i32, %arg0 : i32, i32
  }
  func.func @transform_1(%arg0: i32) -> (i32, i32, i32) {
    %c0_i32 = arith.constant 0 : i32
    %c0_i32_0 = arith.constant 0 : i32
    %c0_i32_1 = arith.constant 0 : i32
    %c0_i32_2 = arith.constant 0 : i32
    return %c0_i32, %c0_i32_0, %c0_i32_1 : i32, i32, i32
  }
  func.func @transform_2(%arg0: i32) -> (i32, i32) {
    %c0_i32 = arith.constant 0 : i32
    %c0_i32_0 = arith.constant 0 : i32
    %c0_i32_1 = arith.constant 0 : i32
    return %c0_i32, %c0_i32_0 : i32, i32
  }
  func.func @transform_3(%arg0: i32) -> (i32, i32) {
    %c0_i32 = arith.constant 0 : i32
    %c0_i32_0 = arith.constant 0 : i32
    %c0_i32_1 = arith.constant 0 : i32
    return %c0_i32, %c0_i32_0 : i32, i32
  }
  func.func @transform_4(%arg0: i32) -> (i32, i32) {
    %c0_i32 = arith.constant 0 : i32
    %c0_i32_0 = arith.constant 0 : i32
    return %c0_i32, %arg0 : i32, i32
  }
  func.func @transform_5(%arg0: i32) -> (i32, i32, i32) {
    %c0_i32 = arith.constant 0 : i32
    %c0_i32_0 = arith.constant 0 : i32
    %c0_i32_1 = arith.constant 0 : i32
    return %arg0, %c0_i32, %c0_i32_0 : i32, i32, i32
  }
}

module attributes {stable_mosaic.version = 11 : i64} {
  func.func @_affine_relu_kernel(%arg0: i32, %arg1: memref<8x256xf32, #tpu.memory_space<vmem>>, %arg2: memref<8x1xf32, #tpu.memory_space<vmem>>, %arg3: memref<8x1xf32, #tpu.memory_space<vmem>>, %arg4: memref<2x8x128xf32, #tpu.memory_space<vmem>>) attributes {dimension_semantics = [#tpu.dimension_semantics<parallel>], iteration_bounds = array<i64: 2>, scalar_prefetch = 0 : i64, scratch_operands = 0 : i64, tpu.core_type = #tpu.core_type<tc>, window_params = [{transform_indices = @transform_0, window_bounds = array<i64: 8, 256>}, {pipeline_mode = #tpu.pipeline_mode<synchronous>, transform_indices = @transform_1, window_bounds = array<i64: 8, 1>}, {pipeline_mode = #tpu.pipeline_mode<synchronous>, transform_indices = @transform_2, window_bounds = array<i64: 8, 1>}, {transform_indices = @transform_3, window_bounds = array<i64: 2, 8, 128>}]} {
    %c0 = arith.constant 0 : index
    %c0_0 = arith.constant 0 : index
    %0 = vector.load %arg1[%c0, %c0_0] : memref<8x256xf32, #tpu.memory_space<vmem>>, vector<8x256xf32>
    %c0_1 = arith.constant 0 : index
    %c0_2 = arith.constant 0 : index
    %1 = vector.load %arg2[%c0_1, %c0_2] : memref<8x1xf32, #tpu.memory_space<vmem>>, vector<8x1xf32>
    %2 = vector.broadcast %1 : vector<8x1xf32> to vector<8x256xf32>
    %3 = arith.mulf %0, %2 : vector<8x256xf32>
    %c0_3 = arith.constant 0 : index
    %c0_4 = arith.constant 0 : index
    %4 = vector.load %arg3[%c0_3, %c0_4] : memref<8x1xf32, #tpu.memory_space<vmem>>, vector<8x1xf32>
    %5 = vector.broadcast %4 : vector<8x1xf32> to vector<8x256xf32>
    %6 = arith.addf %3, %5 : vector<8x256xf32>
    %cst = arith.constant 0.000000e+00 : f32
    %7 = vector.broadcast %cst : f32 to vector<8x256xf32>
    %8 = arith.maximumf %6, %7 : vector<8x256xf32>
    %9 = vector.extract_strided_slice %8 {offsets = [0, 0], sizes = [8, 128], strides = [1, 1]} : vector<8x256xf32> to vector<8x128xf32>
    %c0_5 = arith.constant 0 : index
    %c0_6 = arith.constant 0 : index
    %c0_7 = arith.constant 0 : index
    %10 = vector.load %arg4[%c0_5, %c0_6, %c0_7] : memref<2x8x128xf32, #tpu.memory_space<vmem>>, vector<1x8x128xf32>
    %11 = vector.shape_cast %10 : vector<1x8x128xf32> to vector<8x128xf32>
    %12 = vector.shape_cast %9 : vector<8x128xf32> to vector<1x8x128xf32>
    tpu.vector_store %arg4[%c0_5, %c0_6, %c0_7], %12 {strides = array<i32>} : memref<2x8x128xf32, #tpu.memory_space<vmem>>, vector<1x8x128xf32>,
    %13 = vector.extract_strided_slice %8 {offsets = [0, 128], sizes = [8, 128], strides = [1, 1]} : vector<8x256xf32> to vector<8x128xf32>
    %c1 = arith.constant 1 : index
    %c0_8 = arith.constant 0 : index
    %c0_9 = arith.constant 0 : index
    %14 = vector.load %arg4[%c1, %c0_8, %c0_9] : memref<2x8x128xf32, #tpu.memory_space<vmem>>, vector<1x8x128xf32>
    %15 = vector.shape_cast %14 : vector<1x8x128xf32> to vector<8x128xf32>
    %16 = vector.shape_cast %13 : vector<8x128xf32> to vector<1x8x128xf32>
    tpu.vector_store %arg4[%c1, %c0_8, %c0_9], %16 {strides = array<i32>} : memref<2x8x128xf32, #tpu.memory_space<vmem>>, vector<1x8x128xf32>,
    return
  }
  func.func @transform_0(%arg0: i32) -> (i32, i32) {
    %c0_i32 = arith.constant 0 : i32
    %c0_i32_0 = arith.constant 0 : i32
    return %c0_i32, %arg0 : i32, i32
  }
  func.func @transform_1(%arg0: i32) -> (i32, i32) {
    %c0_i32 = arith.constant 0 : i32
    %c0_i32_0 = arith.constant 0 : i32
    %c0_i32_1 = arith.constant 0 : i32
    return %c0_i32, %c0_i32_0 : i32, i32
  }
  func.func @transform_2(%arg0: i32) -> (i32, i32) {
    %c0_i32 = arith.constant 0 : i32
    %c0_i32_0 = arith.constant 0 : i32
    %c0_i32_1 = arith.constant 0 : i32
    return %c0_i32, %c0_i32_0 : i32, i32
  }
  func.func @transform_3(%arg0: i32) -> (i32, i32, i32) {
    %c0_i32 = arith.constant 0 : i32
    %c0_i32_0 = arith.constant 0 : i32
    %c0_i32_1 = arith.constant 0 : i32
    return %arg0, %c0_i32, %c0_i32_0 : i32, i32, i32
  }
}

</mosaic_0001>

<bundles_post_ra>
// kernel: double_conv.3
= control target key start
LH: loop header
LB: loop body
LE: loop exit
PB: predicated region body
PF: predicated region fallthrough
CT: control target
= control target key end

     0   :  { %s576_s12 = smov 0   ;;  %s626_s0 = inlined_call_operand.vmem [shape: f32[4,4,128], index: 0, kind: input, shape index: {}]   ;;  %s627_s1 = inlined_call_operand.vmem [shape: bf16[3,8,4], index: 1, kind: input, shape index: {}]   ;;  %s628_s2 = inlined_call_operand.vmem [shape: bf16[8,512], index: 2, kind: output, shape index: {0}]   ;;  %s629_s3 = inlined_call_operand.vmem [shape: f32[2,8,2], index: 3, kind: output, shape index: {1}]  }
   0x1 LB: > { %s582_s13 = sadd.s32 4294967295, %s551_s12   ;;  %p502_p0 = scmp.ge.s32.totalorder %s551_s12, 1  ;;  %s551_s12 = sphi %s576_s12, %s14_s12  }
   0x2   : > { %p141_p1 = scmp.lt.s32.totalorder %s551_s12, 3 }
   0x4   : > { %p142_p2 = pnand %p502_p0, %p141_p1 }
   0x5   : > { %s503_s14 = sshll.u32 (!%p142_p2), %s582_s13, 1  ;;  %v553_v0 = vmov (!%p142_p2), 0   ;;  %s554_s19 = smov (!%p142_p2), 1   ;;  %vm221_vm0 = vcmask (!%p142_p2), 1041408   ;;  %v189_v7 = vld [vmem:[%s627_s1 + $0x4] sm:$0xf] (!%p142_p2)  ;;  %v191_v8 = vlaneseq (!%p142_p2) }
   0x6   : > { %145 = sbr.rel (%p142_p2) target bundleno = 521 (0x209), region = 28  ;;  %p170_p3 = scmp.lt.s32.totalorder (!%p142_p2), %s503_s14, 3  ;;  %310 = vmatprep.mubr.bf16.mxu0 (!%p142_p2), %v553_v0  ;;  %260 = vmatprep.mubr.bf16.mxu1 (!%p142_p2), %v553_v0  ;;  %vm217_vm1 = vcmask (!%p142_p2), 31744   ;;  %v188_v31 = vld [vmem:[%s627_s1] sm:$0xf] (!%p142_p2)  ;;  %vm407_vm8 = vcmask (!%p142_p2), 7168  }
   0x7   : > { %s555_s22 = smov (!%p142_p2), 127   ;;  %v192_v9 = vand.u32 (!%p142_p2), 127, %v191_v8  ;;  %v190_v37 = vld [vmem:[%s627_s1 + $0x8] sm:$0xf] (!%p142_p2)  ;;  %p181_p4 = scmp.lt.s32.totalorder (!%p142_p2), %s582_s13, 1  ;;  %vm409_vm9 = vcmask (!%p142_p2), 15360  }
   0x9   : > { %v193_v10 = vadd.s32 (!%p142_p2), 128, %v192_v9  ;;  %v203_v13 = vadd.s32 (!%p142_p2), 4294967295, %v192_v9  ;;  %vm200_vm2 = vcmp.lt.s32.totalorder (!%p142_p2), %v192_v9, 1  ;;  %v326_v16 = vadd.s32 (!%p142_p2), 1, %v192_v9 }
   0xa   : > { %vm323_vm5 = vcmp.lt.s32.totalorder (!%p142_p2), %v192_v9, 127 }
   0xb   : > { %v195_v11 = vand.u32 (!%p142_p2), 127, %v193_v10  ;;  %vm205_vm4 = vcmp.ge.s32.totalorder (!%p142_p2), %v203_v13, 0  ;;  %vm330_vm7 = vcmp.lt.s32.totalorder (!%p142_p2), %v326_v16, 128 }
   0xd   : > { %s631_s14 = smov (!%p170_p3, %s503_s14), 3  ;;  %v204_v12 = vadd.s32 4294967295, %v195_v11  ;;  %v327_v15 = vadd.s32 1, %v195_v11  ;;  %s633_s13 = smov (!%p181_p4, %s582_s13), 1 }
   0xe   : > { %s504_s15 = sshll.u32 %s631_s14, 2  ;;  %s507_s30 = sshll.u32 %s633_s13, 3 }
   0xf   : > { %s173_s18 = scalar_lea.vmem %s626_s0, %s504_s15  ;;  %vm206_vm3 = vcmp.ge.s32.totalorder %v204_v12, 0  ;;  %vm331_vm6 = vcmp.lt.s32.totalorder %v327_v15, 128  ;;  %s179_s29 = scalar_lea.vmem %s628_s2, %s504_s15 }
  0x10   : > { %v186_v1 = vld [vmem:[%s173_s18] sm:$0xf]  ;;  %v187_v2 = vld [vmem:[%s173_s18 + $0x4] sm:$0xf]  ;;  %s184_s6 = scalar_lea.vmem %s629_s3, %s507_s30 }
  0x11   : > { %v535_v3 = vpack.i.bf16 %v187_v2, %v186_v1  ;;  %v216_v4 = vpack.c.bf16 %v187_v2, %v187_v2  ;;  %v215_v5 = vpack.c.bf16 %v186_v1, %v186_v1 }
  0x13   : > { %536 = vrot.lane.b32.xlu0 %v535_v3, %s554_s19  ;;  %508 = vmatprep.subr.msk.bf16.mxu1 %vm221_vm0, %v216_v4  ;;  %v223_v6 = vsel %vm221_vm0, %v215_v5, 0 }
  0x14   : > { %229 = vmatpush1.bf16.msra.mxu1 %v223_v6 }
  0x17   : > { %541 = vrot.lane.b32.xlu0 %v535_v3, %s555_s22  ;;  %509 = vmatmul.mubr.msk.bf16.vlgmr.msra.gmra.mrb[0].mxu1 %vm217_vm1, %v189_v7 }
  0x85   : > { %v537_v14 = vpop.permute.xlu0 %536 }
  0x86   : > { %v539_v17 = vunpack.i.h.bf16 %v537_v14  ;;  %v538_v18 = vunpack.i.l.bf16 %v537_v14 }
  0x88   : > { %v201_v19 = vsel %vm200_vm2, %v538_v18, %v539_v17  ;;  %v202_v20 = vsel %vm200_vm2, %v539_v17, %v538_v18 }
  0x89   : > { %v542_v21 = vpop.permute.xlu0 %541  ;;  %v212_v22 = vsel %vm206_vm3, %v201_v19, 0.0  ;;  %v211_v23 = vsel %vm205_vm4, %v202_v20, 0.0 }
  0x8a   : > { %v544_v24 = vunpack.i.h.bf16 %v542_v21  ;;  %v543_v25 = vunpack.i.l.bf16 %v542_v21  ;;  %v214_v26 = vpack.c.bf16 %v212_v22, %v212_v22  ;;  %v213_v27 = vpack.c.bf16 %v211_v23, %v211_v23 }
  0x8c   : > { %v324_v28 = vsel %vm323_vm5, %v543_v25, %v544_v24  ;;  %v325_v29 = vsel %vm323_vm5, %v544_v24, %v543_v25  ;;  %510 = vmatprep.subr.msk.bf16.mxu0 %vm221_vm0, %v214_v26  ;;  %v273_v30 = vsel %vm221_vm0, %v213_v27, 0 }
  0x8d   : > { %279 = vmatpush1.bf16.msra.mxu0 %v273_v30  ;;  %v335_v32 = vsel %vm331_vm6, %v325_v29, 0.0  ;;  %v334_v33 = vsel %vm330_vm7, %v324_v28, 0.0 }
  0x8e   : > { %v337_v34 = vpack.c.bf16 %v335_v32, %v335_v32  ;;  %v336_v35 = vpack.c.bf16 %v334_v33, %v334_v33 }
  0x90   : > { %511 = vmatmul.mubr.msk.bf16.vlgmr.msra.gmra.mrb[0].mxu0 %vm217_vm1, %v188_v31  ;;  %512 = vmatprep.subr.msk.bf16.mxu0 %vm221_vm0, %v337_v34  ;;  %v342_v36 = vsel %vm221_vm0, %v336_v35, 0 }
  0x91   : > { %348 = vmatpush1.bf16.msra.mxu0 %v342_v36  ;;  %379 = vmatprep.mubr.bf16.mxu0 %v553_v0 }
  0x9c   : > { %513 = vmatmul.mubr.msk.bf16.vlgmr.msra.gmra.mrb[0].mxu0 %vm217_vm1, %v190_v37 }
  0xea   : > { %v262_v38 = vpop.f32.mrb[0].mxu1 }
  0xeb   : > { %v264_v39 = vpop.f32.mrb[1].mxu1 }
  0xec   : > { %v266_v40 = vpop.f32.mrb[2].mxu1 }
  0xed   : > { %v267_v41 = vpop.f32.mrb[3].mxu1 }
 0x16f   : > { %v381_v42 = vpop.f32.mrb[0].mxu0 }
 0x170   : > { %v518_v43 = vadd.f32 %v381_v42, %v262_v38  ;;  %v383_v44 = vpop.f32.mrb[1].mxu0 }
 0x171   : > { %v519_v45 = vadd.f32 %v383_v44, %v264_v39  ;;  %v385_v46 = vpop.f32.mrb[2].mxu0 }
 0x172   : > { %v386_v47 = vpop.f32.mrb[3].mxu0  ;;  %v402_v48 = vmul.f32 %v518_v43, %v518_v43 }
 0x173   : > { %v517_v49 = vpack.c.bf16 %v519_v45, %v518_v43  ;;  %v399_v50 = vadd.f32 %v519_v45, %v518_v43  ;;  %v403_v51 = vmul.f32 %v519_v45, %v519_v45 }
 0x175   : > { %398 = vst [vmem:[%s179_s29] sm:$0xff] %v517_v49  ;;  %400 = vadd.xlane.f32.xlu1 %v399_v50  ;;  %v404_v52 = vadd.f32 %v403_v51, %v402_v48 }
 0x179   : > { %405 = vadd.xlane.f32.xlu1 %v404_v52 }
 0x202   : > { %v401_v53 = vpop.xlane.xlu1 %400 }
 0x206   : > { %v406_v54 = vpop.xlane.xlu1 %405 }
 0x207   : > { %v408_v55 = vsel %vm407_vm8, %v401_v53, %v406_v54 }
 0x208   : > { %410 = vst.msk [vmem:[%s184_s6] sm:$0xff] %vm409_vm9, %v408_v55 }
 0x209 PF: > { %s14_s12 = sadd.s32 1, %s551_s12  }
 0x20a   : > { %p11_p5 = scmp.ge.s32.totalorder %s14_s12, 4  }
 0x20c   :  { %13 = sbr.rel (!%p11_p5) target bundleno = 1 (0x1), region = 70 }

// kernel: double_conv.5
= control target key start
LH: loop header
LB: loop body
LE: loop exit
PB: predicated region body
PF: predicated region fallthrough
CT: control target
= control target key end

     0   :  { %8 = vsyncpa [#allocation3], 0  ;;  %s524_s0 = inlined_call_operand.vmem [shape: f32[8,512], index: 0, kind: input, shape index: {}]   ;;  %s525_s1 = inlined_call_operand.vmem [shape: f32[8,1], index: 1, kind: input, shape index: {}]   ;;  %s526_s2 = inlined_call_operand.vmem [shape: f32[8,1], index: 2, kind: input, shape index: {}]   ;;  %s527_s3 = inlined_call_operand.hbm [shape: f32[4,8,128], index: 3, kind: output, shape index: {}]  }
   0x1   :  { %10 = vsyncpa [#allocation3 + $0x1], 0  ;;  %s416_s12 = smov 0   ;;  %s418_s13 = smov 0  }
   0x2   :  { %s420_s14 = smov 0   ;;  %s422_s15 = smov 0  }
   0x3 LB: > { %s437_s16 = sadd.s32 4294967295, %s390_s15   ;;  %s271_s17 = sadd.s32 4294967294, %s390_s15   ;;  %s390_s15 = sphi %s422_s15, %s533_s15   ;;  %s386_s14 = sphi %s420_s14, %s532_s14   ;;  %s382_s13 = sphi %s418_s13, %s531_s13   ;;  %s378_s12 = sphi %s416_s12, %s530_s12  }
   0x4   : > { %s441_s18 = sadd.s32 1, %s390_s15   ;;  %s91_s19 = sadd.s32 1, %s386_s14 }
   0x5   : > { %s88_s20 = ssub.s32 %s390_s15, %s441_s18  ;;  %p101_p0 = scmp.ne.s32.totalorder %s386_s14, %s382_s13 }
   0x6   : > { %p89_p1 = scmp.eq.s32.totalorder %s88_s20, 0  ;;  %p102_p2 = scmp.eq.s32.totalorder %s437_s16, 1 }
   0x7   : > { %p107_p3 = scmp.ne.s32.totalorder %s382_s13, %s378_s12  ;;  %p108_p4 = scmp.eq.s32.totalorder %s271_s17, 1 }
   0x8   : > { %s452_s21 = scalar_select %p89_p1, %s386_s14, %s91_s19  }
   0x9   : > { %p454_p5 = por %p102_p2, %p101_p0  ;;  %p458_p6 = por %p108_p4, %p107_p3 }
   0xa   : > { %p274_p7 = scmp.ge.s32.totalorder %s390_s15, 1  ;;  %p141_p8 = scmp.lt.s32.totalorder %s390_s15, 3 }
   0xc   : > { %p142_p9 = pnand %p274_p7, %p141_p8 }
   0xd   : > { %v174_v0 = vld [vmem:[%s525_s1] sm:$0xff] (!%p142_p9)  ;;  %v392_v1 = vmov (!%p142_p9), 0   ;;  %s276_s28 = sshll.u32 (!%p142_p9), %s437_s16, 1  ;;  %s162_s30 = sand.u32 (!%p142_p9), 1, %s382_s13  }
   0xe   : > { %145 = sbr.rel (%p142_p9) target bundleno = 166 (0xa6), region = 32  ;;  %327 = vset.pattern.permute.xlu0 (!%p142_p9), %v392_v1  ;;  %v182_v2 = vld [vmem:[%s526_s2] sm:$0xff] (!%p142_p9)  ;;  %p166_p10 = scmp.lt.s32.totalorder (!%p142_p9), %s276_s28, 3 }
   0xf   : > { %177 = vperm.xlu0 (!%p142_p9), %327, %v174_v0   ;;  %s275_s7 = sshll.u32 (!%p142_p9), %s162_s30, 4  ;;  %s284_s10 = sshll.u32 (!%p142_p9), %s437_s16, 8 }
  0x10   : > { %s164_s8 = scalar_lea.vmem (!%p142_p9), [#allocation2], %s275_s7  ;;  %s481_s19 = scalar_lea.hbm (!%p142_p9), %s527_s3, %s284_s10 }
  0x11   : > { %s209_s9 = sshll.u32 (!%p142_p9), %s164_s8, 4  ;;  %s483_s20 = scalar_lea.sflag (!%p142_p9), [#allocation3], %s162_s30  ;;  %s476_s9 = int_to_ptr.vmem [resolvable:$true] %s209_s9 }
  0x12   : > { %s328_s16 = scalar_lea.vmem (!%p142_p9), %s476_s9, 256  ;;  %s393_s24 = smov (!%p142_p9), [#allocation2]  }
  0x13   : > { %185 = vperm.xlu0 (!%p142_p9), %327, %v182_v2   ;;  %p329_p11 = scmp.ne.s32.totalorder (!%p142_p9), %s476_s9, %s328_s16  ;;  %s332_s25 = sshll.u32 (!%p142_p9), %s393_s24, 4  ;;  %s333_s25 = int_to_ptr.vmem [resolvable:$false] %s332_s25 }
  0x14   : > { %s334_s26 = scalar_lea.vmem (!%p142_p9), %s333_s25, 512  ;;  %p335_p0 = scmp.lt.s32.totalorder (!%p142_p9), %s476_s9, %s333_s25 }
  0x15   : > { %s535_s28 = smov (!%p166_p10, %s276_s28), 3  ;;  %p330_p12 = pnand %p329_p11, %p454_p5 }
  0x16   : > { %s277_s29 = sshll.u32 %s535_s28, 3  ;;  %p336_p1 = scmp.lt.s32.totalorder %s334_s26, %s328_s16 }
  0x17   : > { %s169_s6 = scalar_lea.vmem %s524_s0, %s277_s29  ;;  %p331_p13 = pneg %p330_p12 }
  0x18   : > { %v172_v4 = vld [vmem:[%s169_s6] sm:$0xff]  ;;  %v173_v5 = vld [vmem:[%s169_s6 + $0x8] sm:$0xff]  ;;  %p337_p2 = por %p336_p1, %p335_p0 }
  0x1a   : > { %p338_p3 = pnand %p337_p2, %p331_p13 }
  0x8e   : > { %v178_v3 = vpop.permute.xlu0 %177 }
  0x8f   : > { %v180_v6 = vmul.f32 %v178_v3, %v172_v4  ;;  %v181_v7 = vmul.f32 %v178_v3, %v173_v5 }
  0x92   : > { %v186_v8 = vpop.permute.xlu0 %185 }
  0x93   : > { %v188_v9 = vadd.f32 %v186_v8, %v180_v6  ;;  %v189_v10 = vadd.f32 %v186_v8, %v181_v7 }
  0x95   : > { %v190_v11 = vmax.f32 %v188_v9, 0.0  ;;  %v191_v12 = vmax.f32 %v189_v10, 0.0 }
  0x97   : > { %192 = vst [vmem:[%s164_s8] sm:$0xff] %v190_v11  ;;  %278 = vst [vmem:[%s164_s8 + $0x8] sm:$0xff] %v191_v12 }
  0x98   : > { %341 = shalt.err (!%p338_p3)
}
  0x99   : > { %s342_s27 = scalar_lea.hbm %s481_s19, 256  ;;  %s346_s30 = scalar_lea.hbm %s527_s3, 512 }
  0x9a   : > { %p343_p4 = scmp.ne.s32.totalorder %s481_s19, %s342_s27  ;;  %p347_p9 = scmp.lt.u32.totalorder %s481_s19, %s527_s3 }
  0x9b   : > { %p348_p10 = scmp.lt.u32.totalorder %s346_s30, %s342_s27  ;;  %p350_p12 = scmp.lt.u32.totalorder %s342_s27, %s481_s19 }
  0x9c   : > { %p344_p7 = pnand %p343_p4, %p454_p5 }
  0x9d   : > { %p349_p11 = por %p348_p10, %p347_p9 }
  0x9e   : > { %p345_p8 = pneg %p344_p7 }
  0x9f   : > { %p351_p13 = por %p350_p12, %p349_p11 }
  0xa1   : > { %p352_p0 = pnand %p351_p13, %p345_p8 }
  0xa3   : > { %355 = shalt.err (!%p352_p0)
}
  0xa4   : > { %s394_s6 = smov 128   ;;  %s395_s7 = smov 8  }
  0xa5   : > { %285 = dma.vmem_to_hbm [thread:$0]  (%p454_p5), %s476_s9, 256, %s481_s19, %s483_s20, %s394_s6, %s394_s6, %s395_s7  }
  0xa6 PF: > { %p291_p1 = scmp.ge.s32.totalorder %s390_s15, 2  ;;  %s224_s8 = sand.u32 1, %s378_s12  }
  0xa7   : > { %s225_s10 = scalar_lea.sflag [#allocation3], %s224_s8 }
  0xa8   : > { %p288_p2 = pnand %p291_p1, %p458_p6 }
  0xaa   : > { %373 = dma.done.wait (!%p288_p2), %s225_s10, 256  }
  0xab   : > { %375 = vsyncadd (!%p288_p2), %s225_s10, 4294967040  ;;  %p13_p3 = scmp.ge.s32.totalorder %s441_s18, 4   ;;  %s530_s12 = smov %s382_s13 }
  0xac   : > { %s531_s13 = smov %s386_s14  ;;  %s532_s14 = smov %s452_s21 }
  0xad   : > { %s533_s15 = smov %s441_s18  ;;  %15 = sbr.rel (!%p13_p3) target bundleno = 3 (0x3), region = 68 }
  0xb4   :  { %230 = vsyncpa [#allocation3], 1 }
  0xb5   :  { %232 = vsyncpa [#allocation3 + $0x1], 1 }

// kernel: double_conv.4
= control target key start
LH: loop header
LB: loop body
LE: loop exit
PB: predicated region body
PF: predicated region fallthrough
CT: control target
= control target key end

     0   :  { %s651_s18 = smov 0   ;;  %s708_s0 = inlined_call_operand.vmem [shape: bf16[8,512], index: 0, kind: input, shape index: {}]   ;;  %s709_s1 = inlined_call_operand.vmem [shape: bf16[3,8,8], index: 1, kind: input, shape index: {}]   ;;  %s710_s2 = inlined_call_operand.vmem [shape: f32[8,1], index: 2, kind: input, shape index: {}]   ;;  %s711_s3 = inlined_call_operand.vmem [shape: f32[8,1], index: 3, kind: input, shape index: {}]   ;;  %s712_s4 = inlined_call_operand.vmem [shape: f32[8,512], index: 4, kind: output, shape index: {0}]   ;;  %s713_s5 = inlined_call_operand.vmem [shape: f32[2,8,2], index: 5, kind: output, shape index: {1}]  }
   0x1 LB: > { %s657_s19 = sadd.s32 4294967295, %s616_s18   ;;  %p568_p0 = scmp.ge.s32.totalorder %s616_s18, 1  ;;  %s616_s18 = sphi %s651_s18, %s16_s18  }
   0x2   : > { %p191_p1 = scmp.lt.s32.totalorder %s616_s18, 3 }
   0x4   : > { %p192_p2 = pnand %p568_p0, %p191_p1 }
   0x5   : > { %v243_v0 = vld [vmem:[%s710_s2] sm:$0xff] (!%p192_p2)  ;;  %v618_v1 = vmov (!%p192_p2), 0   ;;  %s569_s24 = sshll.u32 (!%p192_p2), %s657_s19, 1  ;;  %vm294_vm0 = vcmask (!%p192_p2), 1043456   ;;  %s619_s29 = smov (!%p192_p2), 1   ;;  %vm290_vm1 = vcmask (!%p192_p2), 64512   ;;  %v264_v19 = vlaneseq (!%p192_p2) }
   0x6   : > { %195 = sbr.rel (%p192_p2) target bundleno = 645 (0x285), region = 36  ;;  %599 = vset.pattern.permute.xlu0 (!%p192_p2), %v618_v1  ;;  %383 = vmatprep.mubr.bf16.mxu0 (!%p192_p2), %v618_v1  ;;  %v251_v2 = vld [vmem:[%s711_s3] sm:$0xff] (!%p192_p2)  ;;  %p224_p3 = scmp.lt.s32.totalorder (!%p192_p2), %s569_s24, 3  ;;  %v263_v48 = vld [vmem:[%s709_s1 + $0x8] sm:$0xf] (!%p192_p2)  ;;  %vm473_vm8 = vcmask (!%p192_p2), 7168  }
   0x7   : > { %246 = vperm.xlu0 (!%p192_p2), %599, %v243_v0   ;;  %333 = vmatprep.mubr.bf16.mxu1 (!%p192_p2), %v618_v1  ;;  %v262_v18 = vld [vmem:[%s709_s1 + $0x4] sm:$0xf] (!%p192_p2)  ;;  %s620_s7 = smov (!%p192_p2), 127   ;;  %v265_v20 = vand.u32 (!%p192_p2), 127, %v264_v19  ;;  %v261_v42 = vld [vmem:[%s709_s1] sm:$0xf] (!%p192_p2) }
   0x8   : > { %p235_p4 = scmp.lt.s32.totalorder (!%p192_p2), %s657_s19, 1  ;;  %vm475_vm9 = vcmask (!%p192_p2), 15360  }
   0x9   : > { %v266_v21 = vadd.s32 (!%p192_p2), 128, %v265_v20  ;;  %v276_v24 = vadd.s32 (!%p192_p2), 4294967295, %v265_v20  ;;  %vm273_vm2 = vcmp.lt.s32.totalorder (!%p192_p2), %v265_v20, 1  ;;  %v399_v27 = vadd.s32 (!%p192_p2), 1, %v265_v20 }
   0xa   : > { %vm396_vm5 = vcmp.lt.s32.totalorder (!%p192_p2), %v265_v20, 127 }
   0xb   : > { %254 = vperm.xlu0 (!%p192_p2), %599, %v251_v2   ;;  %v268_v22 = vand.u32 (!%p192_p2), 127, %v266_v21  ;;  %vm278_vm4 = vcmp.ge.s32.totalorder (!%p192_p2), %v276_v24, 0  ;;  %vm403_vm7 = vcmp.lt.s32.totalorder (!%p192_p2), %v399_v27, 128 }
   0xd   : > { %s715_s24 = smov (!%p224_p3, %s569_s24), 3  ;;  %v277_v23 = vadd.s32 4294967295, %v268_v22  ;;  %v400_v26 = vadd.s32 1, %v268_v22  ;;  %s717_s19 = smov (!%p235_p4, %s657_s19), 1 }
   0xe   : > { %s570_s25 = sshll.u32 %s715_s24, 2  ;;  %s572_s12 = sshll.u32 %s715_s24, 3 }
   0xf   : > { %s227_s28 = scalar_lea.vmem %s708_s0, %s570_s25  ;;  %vm279_vm3 = vcmp.ge.s32.totalorder %v277_v23, 0  ;;  %vm404_vm6 = vcmp.lt.s32.totalorder %v400_v26, 128  ;;  %s233_s15 = scalar_lea.vmem %s712_s4, %s572_s12 }
  0x10   : > { %v240_v3 = vld [vmem:[%s227_s28] sm:$0xff]  ;;  %s573_s16 = sshll.u32 %s717_s19, 3 }
  0x11   : > { %v241_v4 = vunpack.c.l.bf16 %v240_v3  ;;  %v242_v5 = vunpack.c.h.bf16 %v240_v3  ;;  %s238_s21 = scalar_lea.vmem %s713_s5, %s573_s16 }
  0x86   : > { %v247_v6 = vpop.permute.xlu0 %246 }
  0x87   : > { %v249_v7 = vmul.f32 %v247_v6, %v241_v4  ;;  %v250_v8 = vmul.f32 %v247_v6, %v242_v5 }
  0x8a   : > { %v255_v9 = vpop.permute.xlu0 %254 }
  0x8b   : > { %v257_v10 = vadd.f32 %v255_v9, %v249_v7  ;;  %v258_v11 = vadd.f32 %v255_v9, %v250_v8 }
  0x8d   : > { %v259_v12 = vmax.f32 %v257_v10, 0.0  ;;  %v260_v13 = vmax.f32 %v258_v11, 0.0 }
  0x8f   : > { %v289_v14 = vpack.c.bf16 %v260_v13, %v260_v13  ;;  %v600_v15 = vpack.i.bf16 %v260_v13, %v259_v12  ;;  %v288_v16 = vpack.c.bf16 %v259_v12, %v259_v12 }
  0x91   : > { %574 = vmatprep.subr.msk.bf16.mxu1 %vm294_vm0, %v289_v14  ;;  %601 = vrot.lane.b32.xlu1 %v600_v15, %s619_s29  ;;  %v296_v17 = vsel %vm294_vm0, %v288_v16, 0 }
  0x92   : > { %302 = vmatpush1.bf16.msra.mxu1 %v296_v17 }
  0x95   : > { %606 = vrot.lane.b32.xlu1 %v600_v15, %s620_s7  ;;  %575 = vmatmul.mubr.msk.bf16.vlgmr.msra.gmra.mrb[0].mxu1 %vm290_vm1, %v262_v18 }
 0x103   : > { %v602_v25 = vpop.permute.xlu1 %601 }
 0x104   : > { %v604_v28 = vunpack.i.h.bf16 %v602_v25  ;;  %v603_v29 = vunpack.i.l.bf16 %v602_v25 }
 0x106   : > { %v274_v30 = vsel %vm273_vm2, %v603_v29, %v604_v28  ;;  %v275_v31 = vsel %vm273_vm2, %v604_v28, %v603_v29 }
 0x107   : > { %v607_v32 = vpop.permute.xlu1 %606  ;;  %v285_v33 = vsel %vm279_vm3, %v274_v30, 0.0  ;;  %v284_v34 = vsel %vm278_vm4, %v275_v31, 0.0 }
 0x108   : > { %v609_v35 = vunpack.i.h.bf16 %v607_v32  ;;  %v608_v36 = vunpack.i.l.bf16 %v607_v32  ;;  %v287_v37 = vpack.c.bf16 %v285_v33, %v285_v33  ;;  %v286_v38 = vpack.c.bf16 %v284_v34, %v284_v34 }
 0x10a   : > { %v397_v39 = vsel %vm396_vm5, %v608_v36, %v609_v35  ;;  %v398_v40 = vsel %vm396_vm5, %v609_v35, %v608_v36  ;;  %576 = vmatprep.subr.msk.bf16.mxu0 %vm294_vm0, %v287_v37  ;;  %v346_v41 = vsel %vm294_vm0, %v286_v38, 0 }
 0x10b   : > { %352 = vmatpush1.bf16.msra.mxu0 %v346_v41  ;;  %v408_v43 = vsel %vm404_vm6, %v398_v40, 0.0  ;;  %v407_v44 = vsel %vm403_vm7, %v397_v39, 0.0 }
 0x10c   : > { %v410_v45 = vpack.c.bf16 %v408_v43, %v408_v43  ;;  %v409_v46 = vpack.c.bf16 %v407_v44, %v407_v44 }
 0x10e   : > { %577 = vmatmul.mubr.msk.bf16.vlgmr.msra.gmra.mrb[0].mxu0 %vm290_vm1, %v261_v42  ;;  %578 = vmatprep.subr.msk.bf16.mxu0 %vm294_vm0, %v410_v45  ;;  %v415_v47 = vsel %vm294_vm0, %v409_v46, 0 }
 0x10f   : > { %421 = vmatpush1.bf16.msra.mxu0 %v415_v47  ;;  %452 = vmatprep.mubr.bf16.mxu0 %v618_v1 }
 0x11a   : > { %579 = vmatmul.mubr.msk.bf16.vlgmr.msra.gmra.mrb[0].mxu0 %vm290_vm1, %v263_v48 }
 0x168   : > { %v335_v49 = vpop.f32.mrb[0].mxu1 }
 0x169   : > { %v337_v50 = vpop.f32.mrb[1].mxu1 }
 0x16a   : > { %v339_v51 = vpop.f32.mrb[2].mxu1 }
 0x16b   : > { %v340_v52 = vpop.f32.mrb[3].mxu1 }
 0x1ed   : > { %v454_v53 = vpop.f32.mrb[0].mxu0 }
 0x1ee   : > { %v582_v54 = vadd.f32 %v454_v53, %v335_v49  ;;  %v456_v55 = vpop.f32.mrb[1].mxu0 }
 0x1ef   : > { %v583_v56 = vadd.f32 %v456_v55, %v337_v50  ;;  %v458_v57 = vpop.f32.mrb[2].mxu0 }
 0x1f0   : > { %463 = vst [vmem:[%s233_s15] sm:$0xff] %v582_v54  ;;  %v459_v58 = vpop.f32.mrb[3].mxu0  ;;  %v468_v59 = vmul.f32 %v582_v54, %v582_v54 }
 0x1f1   : > { %464 = vst [vmem:[%s233_s15 + $0x8] sm:$0xff] %v583_v56  ;;  %v465_v60 = vadd.f32 %v583_v56, %v582_v54  ;;  %v469_v61 = vmul.f32 %v583_v56, %v583_v56 }
 0x1f3   : > { %466 = vadd.xlane.f32.xlu0 %v465_v60  ;;  %v470_v62 = vadd.f32 %v469_v61, %v468_v59 }
 0x1f5   : > { %471 = vadd.xlane.f32.xlu1 %v470_v62 }
 0x280   : > { %v467_v63 = vpop.xlane.xlu0 %466 }
 0x282   : > { %v472_v0 = vpop.xlane.xlu1 %471 }
 0x283   : > { %v474_v1 = vsel %vm473_vm8, %v467_v63, %v472_v0 }
 0x284   : > { %476 = vst.msk [vmem:[%s238_s21] sm:$0xff] %vm475_vm9, %v474_v1 }
 0x285 PF: > { %s16_s18 = sadd.s32 1, %s616_s18  }
 0x286   : > { %p13_p5 = scmp.ge.s32.totalorder %s16_s18, 4  }
 0x288   :  { %15 = sbr.rel (!%p13_p5) target bundleno = 1 (0x1), region = 78 }

</bundles_post_ra>
